<compile_context>
chip_gen: v6e
topology: v6e:2x2x1
jax: 0.10.0
libtpu: 0.0.40
codegen_flags: <defaults>
</compile_context>

<pallas_src>
import math

import jax
import jax.numpy as jnp
from jax.experimental import pallas as pl
from jax.experimental.pallas import tpu as pltpu

# --- small shapes consistent with the module's forward -----------------------
N = 8                       # samples; MHA treats this as sequence length (unbatched 2D input)
TEXT_DIM = 16
IMG_C, IMG_H, IMG_W = 4, 16, 16
HIDDEN = 32                 # args.hidden_size
NUM_HEADS = 4
HEAD_DIM = HIDDEN // NUM_HEADS
MIDDLE = 16                 # args.middle_hidden_size
NUM_CLASSES = 3
S = 2 * N                   # fused text+image sequence length inside the kernel

# --- packed parameter slab layout: rows of a (PARAM_ROWS, 128) f32 buffer ----
LANES = 128
R_WQKV = 0          # (HIDDEN, 3*HIDDEN)  fused q/k/v in-proj, transposed
R_WO = 32           # (HIDDEN, HIDDEN)    out-proj, transposed
R_W1T = 64          # (HIDDEN, HIDDEN)    classifier L1, text half, transposed
R_W1I = 96          # (HIDDEN, HIDDEN)    classifier L1, image half, transposed
R_W2 = 128          # (HIDDEN, MIDDLE)    classifier L2, transposed
R_W3 = 160          # (MIDDLE, NUM_CLASSES) classifier L3, transposed
R_BIAS = 176        # row 176: bqkv(96) | 177: bo(32) | 178: b1(32) | 179: b2(16) | 180: b3(3)
PARAM_ROWS = 184    # multiple of 8 sublanes


# ----------------------------- Pallas kernel ---------------------------------
def multimodel2_kernel(txt_ref, img_ref, w_ref, out_ref):
    """Fused shared multi-head self-attention (text+image) + 3-layer classifier head."""
    scale = 1.0 / math.sqrt(HEAD_DIM)

    # fuse the two modality streams into one (2N, HIDDEN) sequence
    x = jnp.concatenate([txt_ref[...], img_ref[...]], axis=0)            # (16, 32)

    # one fused QKV in-projection (weights pre-transposed & concatenated)
    wqkv = w_ref[R_WQKV:R_WQKV + HIDDEN, 0:3 * HIDDEN]                   # (32, 96)
    bqkv = w_ref[R_BIAS:R_BIAS + 1, 0:3 * HIDDEN]                        # (1, 96)
    qkv = jnp.dot(x, wqkv, preferred_element_type=jnp.float32) + bqkv    # (16, 96)
    q = qkv[:, 0:HIDDEN]
    k = qkv[:, HIDDEN:2 * HIDDEN]
    v = qkv[:, 2 * HIDDEN:3 * HIDDEN]

    # block-diagonal bias: text rows attend only to text keys, image rows to image keys
    row = jax.lax.broadcasted_iota(jnp.int32, (S, S), 0)
    col = jax.lax.broadcasted_iota(jnp.int32, (S, S), 1)
    stream_bias = jnp.where((row < N) == (col < N), 0.0, -1e30)          # (16, 16)

    # per-head attention via lane masks: zeroed lanes drop out of the contraction,
    # so full-width matmuls give exactly the per-head scores / PV products.
    lane = jax.lax.broadcasted_iota(jnp.int32, (1, HIDDEN), 1)
    concat = jnp.zeros((S, HIDDEN), jnp.float32)                         # concat of heads
    for h in range(NUM_HEADS):
        mh = ((lane >= h * HEAD_DIM) & (lane < (h + 1) * HEAD_DIM)).astype(jnp.float32)
        qh = q * (scale * mh)
        s = jax.lax.dot_general(qh, k, (((1,), (1,)), ((), ())),
                                preferred_element_type=jnp.float32)      # (16, 16)
        s = s + stream_bias
        s = s - jnp.max(s, axis=-1, keepdims=True)
        p = jnp.exp(s)
        p = p * pl.reciprocal(jnp.sum(p, axis=-1, keepdims=True), approx=True)
        concat = concat + jnp.dot(p, v * mh, preferred_element_type=jnp.float32)

    # single out-projection for both streams
    wo = w_ref[R_WO:R_WO + HIDDEN, 0:HIDDEN]
    bo = w_ref[R_BIAS + 1:R_BIAS + 2, 0:HIDDEN]
    attn = jnp.dot(concat, wo, preferred_element_type=jnp.float32) + bo  # (16, 32)

    x_txt = attn[0:N, :]
    x_img = attn[N:S, :]

    # torch.stack(dim=1) + Flatten + Linear(2H -> H) == split matmul over the two halves
    w1t = w_ref[R_W1T:R_W1T + HIDDEN, 0:HIDDEN]
    w1i = w_ref[R_W1I:R_W1I + HIDDEN, 0:HIDDEN]
    b1 = w_ref[R_BIAS + 2:R_BIAS + 3, 0:HIDDEN]
    h1 = (jnp.dot(x_txt, w1t, preferred_element_type=jnp.float32)
          + jnp.dot(x_img, w1i, preferred_element_type=jnp.float32) + b1)
    h1 = jnp.maximum(h1, 0.0)
    # Dropout(p=args.dropout): identity at inference.

    w2 = w_ref[R_W2:R_W2 + HIDDEN, 0:MIDDLE]
    b2 = w_ref[R_BIAS + 3:R_BIAS + 4, 0:MIDDLE]
    h2 = jnp.maximum(jnp.dot(h1, w2, preferred_element_type=jnp.float32) + b2, 0.0)

    w3 = w_ref[R_W3:R_W3 + MIDDLE, 0:NUM_CLASSES]
    b3 = w_ref[R_BIAS + 4:R_BIAS + 5, 0:NUM_CLASSES]
    out_ref[...] = jnp.dot(h2, w3, preferred_element_type=jnp.float32) + b3


# ------------------------- one-time parameter packing ------------------------
def pack_params(p):
    """Pack all PyTorch-convention weights/biases into a single lane-dense f32 slab.

    Done ONCE outside the per-call path (no per-launch transposes/concats)."""
    slab = jnp.zeros((PARAM_ROWS, LANES), jnp.float32)
    wqkv_t = jnp.concatenate([p['wq'].T, p['wk'].T, p['wv'].T], axis=1)   # (32, 96)
    w1_t = p['w1'].T                                                      # (64, 32)
    slab = slab.at[R_WQKV:R_WQKV + HIDDEN, 0:3 * HIDDEN].set(wqkv_t)
    slab = slab.at[R_WO:R_WO + HIDDEN, 0:HIDDEN].set(p['wo'].T)
    slab = slab.at[R_W1T:R_W1T + HIDDEN, 0:HIDDEN].set(w1_t[0:HIDDEN, :])
    slab = slab.at[R_W1I:R_W1I + HIDDEN, 0:HIDDEN].set(w1_t[HIDDEN:, :])
    slab = slab.at[R_W2:R_W2 + HIDDEN, 0:MIDDLE].set(p['w2'].T)
    slab = slab.at[R_W3:R_W3 + MIDDLE, 0:NUM_CLASSES].set(p['w3'].T)
    bqkv = jnp.concatenate([p['bq'], p['bk'], p['bv']], axis=1)           # (1, 96)
    slab = slab.at[R_BIAS + 0:R_BIAS + 1, 0:3 * HIDDEN].set(bqkv)
    slab = slab.at[R_BIAS + 1:R_BIAS + 2, 0:HIDDEN].set(p['bo'])
    slab = slab.at[R_BIAS + 2:R_BIAS + 3, 0:HIDDEN].set(p['b1'])
    slab = slab.at[R_BIAS + 3:R_BIAS + 4, 0:MIDDLE].set(p['b2'])
    slab = slab.at[R_BIAS + 4:R_BIAS + 5, 0:NUM_CLASSES].set(p['b3'])
    return slab


def multimodel2_forward(text_out, img_out, param_slab):
    """Single pallas_call: 3 input DMAs (txt feats, img feats, packed params), 1 output."""
    # TODO(synk): for real batched workloads, add a leading "parallel" grid axis over
    # independent forward calls so megacore (v7x) can shard and the MXU fills up.
    vmem = pl.BlockSpec(memory_space=pltpu.MemorySpace.VMEM)
    return pl.pallas_call(
        multimodel2_kernel,
        out_shape=jax.ShapeDtypeStruct((N, NUM_CLASSES), jnp.float32),
        in_specs=[vmem, vmem, vmem],
        out_specs=vmem,
    )(text_out, img_out, param_slab)


# ---------------------- encoder stand-ins (plain-JAX glue) -------------------
# TODO(synk): TextModel / ImageModel are not defined in the provided source; they are
# replaced with deterministic linear encoders producing (N, HIDDEN) features.
def text_encoder(texts, we, be):
    return jnp.tanh(texts @ we + be)                       # (N, HIDDEN)


def image_encoder(imgs, wi, bi):
    pooled = jnp.mean(imgs, axis=(2, 3))                   # NCHW -> (N, C) global avg pool
    return jnp.tanh(pooled @ wi + bi)                      # (N, HIDDEN)


# --------------------------- pure-JAX reference ------------------------------
def reference_forward(text_out, img_out, p):
    def mha(x):
        q = x @ p['wq'].T + p['bq'][0]
        k = x @ p['wk'].T + p['bk'][0]
        v = x @ p['wv'].T + p['bv'][0]
        qh = q.reshape(N, NUM_HEADS, HEAD_DIM).transpose(1, 0, 2)
        kh = k.reshape(N, NUM_HEADS, HEAD_DIM).transpose(1, 0, 2)
        vh = v.reshape(N, NUM_HEADS, HEAD_DIM).transpose(1, 0, 2)
        s = jnp.einsum('hqd,hkd->hqk', qh, kh) / math.sqrt(HEAD_DIM)
        a = jax.nn.softmax(s, axis=-1)
        o = jnp.einsum('hqk,hkd->hqd', a, vh).transpose(1, 0, 2).reshape(N, HIDDEN)
        return o @ p['wo'].T + p['bo'][0]

    x_txt = mha(text_out)
    x_img = mha(img_out)
    multi = jnp.concatenate([x_txt, x_img], axis=-1)        # stack(dim=1) + flatten
    h1 = jax.nn.relu(multi @ p['w1'].T + p['b1'][0])
    h2 = jax.nn.relu(h1 @ p['w2'].T + p['b2'][0])
    return h2 @ p['w3'].T + p['b3'][0]


# ------------------------------------ main -----------------------------------
if __name__ == "__main__":
    key = jax.random.PRNGKey(0)
    ks = jax.random.split(key, 24)
    f32 = jnp.float32

    # deterministic example inputs
    texts = jax.random.normal(ks[0], (N, TEXT_DIM), f32)
    imgs = jax.random.normal(ks[1], (N, IMG_C, IMG_H, IMG_W), f32)

    # deterministic parameters (PyTorch weight convention: Linear weight is (out, in))
    params = {
        # encoder stand-ins
        'we': 0.1 * jax.random.normal(ks[2], (TEXT_DIM, HIDDEN), f32),
        'be': 0.01 * jax.random.normal(ks[3], (HIDDEN,), f32),
        'wi': 0.1 * jax.random.normal(ks[4], (IMG_C, HIDDEN), f32),
        'bi': 0.01 * jax.random.normal(ks[5], (HIDDEN,), f32),
        # nn.MultiheadAttention (in_proj split into q/k/v), biases kept 2D
        'wq': 0.1 * jax.random.normal(ks[6], (HIDDEN, HIDDEN), f32),
        'wk': 0.1 * jax.random.normal(ks[7], (HIDDEN, HIDDEN), f32),
        'wv': 0.1 * jax.random.normal(ks[8], (HIDDEN, HIDDEN), f32),
        'bq': 0.01 * jax.random.normal(ks[9], (1, HIDDEN), f32),
        'bk': 0.01 * jax.random.normal(ks[10], (1, HIDDEN), f32),
        'bv': 0.01 * jax.random.normal(ks[11], (1, HIDDEN), f32),
        'wo': 0.1 * jax.random.normal(ks[12], (HIDDEN, HIDDEN), f32),
        'bo': 0.01 * jax.random.normal(ks[13], (1, HIDDEN), f32),
        # classifier head
        'w1': 0.1 * jax.random.normal(ks[14], (HIDDEN, 2 * HIDDEN), f32),
        'b1': 0.01 * jax.random.normal(ks[15], (1, HIDDEN), f32),
        'w2': 0.1 * jax.random.normal(ks[16], (MIDDLE, HIDDEN), f32),
        'b2': 0.01 * jax.random.normal(ks[17], (1, MIDDLE), f32),
        'w3': 0.1 * jax.random.normal(ks[18], (NUM_CLASSES, MIDDLE), f32),
        'b3': 0.01 * jax.random.normal(ks[19], (1, NUM_CLASSES), f32),
    }

    # one-time parameter packing (kernel layout), reused across calls
    param_slab = jax.block_until_ready(pack_params(params))

    # encoder glue (plain JAX)
    text_out = text_encoder(texts, params['we'], params['be'])
    img_out = image_encoder(imgs, params['wi'], params['bi'])

    # Pallas kernel
    out = multimodel2_forward(text_out, img_out, param_slab)
    out = jax.block_until_ready(out)
    assert out.shape == (N, NUM_CLASSES), out.shape

    # correctness check against pure-JAX reference (approx reciprocal -> looser tol)
    ref = reference_forward(text_out, img_out, params)
    assert jnp.allclose(out, ref, atol=1e-2, rtol=1e-2), (out, ref)

    print("KERNEL_OK")
</pallas_src>

<mosaic_0001>
module attributes {stable_mosaic.version = 11 : i64} {
  func.func @multimodel2_kernel(%arg0: memref<8x32xf32, #tpu.memory_space<vmem>>, %arg1: memref<8x32xf32, #tpu.memory_space<vmem>>, %arg2: memref<184x128xf32, #tpu.memory_space<vmem>>, %arg3: memref<8x3xf32, #tpu.memory_space<vmem>>) attributes {dimension_semantics = [], scalar_prefetch = 0 : i64, scratch_operands = 0 : i64, tpu.core_type = #tpu.core_type<tc>} {
    %c0 = arith.constant 0 : index
    %c0_0 = arith.constant 0 : index
    %0 = vector.load %arg0[%c0, %c0_0] : memref<8x32xf32, #tpu.memory_space<vmem>>, vector<8x32xf32>
    %c0_1 = arith.constant 0 : index
    %c0_2 = arith.constant 0 : index
    %1 = vector.load %arg1[%c0_1, %c0_2] : memref<8x32xf32, #tpu.memory_space<vmem>>, vector<8x32xf32>
    %2 = tpu.concatenate %0, %1 in 0 : vector<8x32xf32>, vector<8x32xf32> -> vector<16x32xf32>
    %c0_3 = arith.constant 0 : index
    %c0_4 = arith.constant 0 : index
    %3 = vector.load %arg2[%c0_3, %c0_4] : memref<184x128xf32, #tpu.memory_space<vmem>>, vector<32x96xf32>
    %c176 = arith.constant 176 : index
    %c0_5 = arith.constant 0 : index
    %4 = vector.load %arg2[%c176, %c0_5] : memref<184x128xf32, #tpu.memory_space<vmem>>, vector<1x96xf32>
    %cst = arith.constant dense<0.000000e+00> : vector<16x96xf32>
    %5 = tpu.matmul %2, %3, %cst {dimension_numbers = #tpu.dot_dimension_numbers<[1], [0], [0], [1], [0, 0, 1, 1], [], []>} : vector<16x32xf32>, vector<32x96xf32>, vector<16x96xf32> -> vector<16x96xf32>
    %6 = vector.broadcast %4 : vector<1x96xf32> to vector<16x96xf32>
    %7 = arith.addf %5, %6 : vector<16x96xf32>
    %8 = vector.extract_strided_slice %7 {offsets = [0, 0], sizes = [16, 32], strides = [1, 1]} : vector<16x96xf32> to vector<16x32xf32>
    %9 = vector.extract_strided_slice %7 {offsets = [0, 32], sizes = [16, 32], strides = [1, 1]} : vector<16x96xf32> to vector<16x32xf32>
    %10 = vector.extract_strided_slice %7 {offsets = [0, 64], sizes = [16, 32], strides = [1, 1]} : vector<16x96xf32> to vector<16x32xf32>
    %11 = tpu.iota {dimensions = array<i32: 0>} : vector<16x16xi32>
    %12 = tpu.iota {dimensions = array<i32: 1>} : vector<16x16xi32>
    %c8_i32 = arith.constant 8 : i32
    %13 = vector.broadcast %c8_i32 : i32 to vector<16x16xi32>
    %14 = arith.cmpi slt, %11, %13 : vector<16x16xi32>
    %c8_i32_6 = arith.constant 8 : i32
    %15 = vector.broadcast %c8_i32_6 : i32 to vector<16x16xi32>
    %16 = arith.cmpi slt, %12, %15 : vector<16x16xi32>
    %17 = arith.xori %14, %16 : vector<16x16xi1>
    %cst_7 = arith.constant dense<true> : vector<16x16xi1>
    %18 = arith.xori %17, %cst_7 : vector<16x16xi1>
    %cst_8 = arith.constant 0.000000e+00 : f32
    %cst_9 = arith.constant -1.000000e+30 : f32
    %19 = vector.broadcast %cst_8 : f32 to vector<16x16xf32>
    %20 = vector.broadcast %cst_9 : f32 to vector<16x16xf32>
    %21 = arith.select %18, %19, %20 : vector<16x16xi1>, vector<16x16xf32>
    %22 = tpu.iota {dimensions = array<i32: 1>} : vector<1x32xi32>
    %cst_10 = arith.constant 0.000000e+00 : f32
    %23 = vector.broadcast %cst_10 : f32 to vector<16x32xf32>
    %c0_i32 = arith.constant 0 : i32
    %24 = vector.broadcast %c0_i32 : i32 to vector<1x32xi32>
    %25 = arith.cmpi sge, %22, %24 : vector<1x32xi32>
    %c8_i32_11 = arith.constant 8 : i32
    %26 = vector.broadcast %c8_i32_11 : i32 to vector<1x32xi32>
    %27 = arith.cmpi slt, %22, %26 : vector<1x32xi32>
    %28 = arith.andi %25, %27 : vector<1x32xi1>
    %29 = arith.extui %28 : vector<1x32xi1> to vector<1x32xi32>
    %30 = arith.sitofp %29 : vector<1x32xi32> to vector<1x32xf32>
    %cst_12 = arith.constant 0.353553385 : f32
    %31 = vector.broadcast %cst_12 : f32 to vector<1x32xf32>
    %32 = arith.mulf %31, %30 : vector<1x32xf32>
    %33 = vector.broadcast %32 : vector<1x32xf32> to vector<16x32xf32>
    %34 = arith.mulf %8, %33 : vector<16x32xf32>
    %cst_13 = arith.constant dense<0.000000e+00> : vector<16x16xf32>
    %35 = tpu.matmul %34, %9, %cst_13 {dimension_numbers = #tpu.dot_dimension_numbers<[1], [1], [0], [0], [0, 0, 1, 0], [], []>} : vector<16x32xf32>, vector<16x32xf32>, vector<16x16xf32> -> vector<16x16xf32>
    %36 = arith.addf %35, %21 : vector<16x16xf32>
    %cst_14 = arith.constant dense<0xFF800000> : vector<16xf32>
    %37 = vector.multi_reduction <maximumf>, %36, %cst_14 [1] : vector<16x16xf32> to vector<16xf32>
    %38 = vector.shape_cast %37 : vector<16xf32> to vector<16x1xf32>
    %39 = vector.broadcast %38 : vector<16x1xf32> to vector<16x16xf32>
    %40 = arith.subf %36, %39 : vector<16x16xf32>
    %41 = math.exp %40 : vector<16x16xf32>
    %cst_15 = arith.constant dense<0.000000e+00> : vector<16xf32>
    %42 = vector.multi_reduction <add>, %41, %cst_15 [1] : vector<16x16xf32> to vector<16xf32>
    %43 = vector.shape_cast %42 : vector<16xf32> to vector<16x1xf32>
    %44 = tpu.reciprocal %43 {approx = true} : vector<16x1xf32> -> vector<16x1xf32>
    %45 = vector.broadcast %44 : vector<16x1xf32> to vector<16x16xf32>
    %46 = arith.mulf %41, %45 : vector<16x16xf32>
    %47 = vector.broadcast %30 : vector<1x32xf32> to vector<16x32xf32>
    %48 = arith.mulf %10, %47 : vector<16x32xf32>
    %cst_16 = arith.constant dense<0.000000e+00> : vector<16x32xf32>
    %49 = tpu.matmul %46, %48, %cst_16 {dimension_numbers = #tpu.dot_dimension_numbers<[1], [0], [0], [1], [0, 0, 1, 1], [], []>} : vector<16x16xf32>, vector<16x32xf32>, vector<16x32xf32> -> vector<16x32xf32>
    %50 = arith.addf %23, %49 : vector<16x32xf32>
    %c8_i32_17 = arith.constant 8 : i32
    %51 = vector.broadcast %c8_i32_17 : i32 to vector<1x32xi32>
    %52 = arith.cmpi sge, %22, %51 : vector<1x32xi32>
    %c16_i32 = arith.constant 16 : i32
    %53 = vector.broadcast %c16_i32 : i32 to vector<1x32xi32>
    %54 = arith.cmpi slt, %22, %53 : vector<1x32xi32>
    %55 = arith.andi %52, %54 : vector<1x32xi1>
    %56 = arith.extui %55 : vector<1x32xi1> to vector<1x32xi32>
    %57 = arith.sitofp %56 : vector<1x32xi32> to vector<1x32xf32>
    %cst_18 = arith.constant 0.353553385 : f32
    %58 = vector.broadcast %cst_18 : f32 to vector<1x32xf32>
    %59 = arith.mulf %58, %57 : vector<1x32xf32>
    %60 = vector.broadcast %59 : vector<1x32xf32> to vector<16x32xf32>
    %61 = arith.mulf %8, %60 : vector<16x32xf32>
    %cst_19 = arith.constant dense<0.000000e+00> : vector<16x16xf32>
    %62 = tpu.matmul %61, %9, %cst_19 {dimension_numbers = #tpu.dot_dimension_numbers<[1], [1], [0], [0], [0, 0, 1, 0], [], []>} : vector<16x32xf32>, vector<16x32xf32>, vector<16x16xf32> -> vector<16x16xf32>
    %63 = arith.addf %62, %21 : vector<16x16xf32>
    %cst_20 = arith.constant dense<0xFF800000> : vector<16xf32>
    %64 = vector.multi_reduction <maximumf>, %63, %cst_20 [1] : vector<16x16xf32> to vector<16xf32>
    %65 = vector.shape_cast %64 : vector<16xf32> to vector<16x1xf32>
    %66 = vector.broadcast %65 : vector<16x1xf32> to vector<16x16xf32>
    %67 = arith.subf %63, %66 : vector<16x16xf32>
    %68 = math.exp %67 : vector<16x16xf32>
    %cst_21 = arith.constant dense<0.000000e+00> : vector<16xf32>
    %69 = vector.multi_reduction <add>, %68, %cst_21 [1] : vector<16x16xf32> to vector<16xf32>
    %70 = vector.shape_cast %69 : vector<16xf32> to vector<16x1xf32>
    %71 = tpu.reciprocal %70 {approx = true} : vector<16x1xf32> -> vector<16x1xf32>
    %72 = vector.broadcast %71 : vector<16x1xf32> to vector<16x16xf32>
    %73 = arith.mulf %68, %72 : vector<16x16xf32>
    %74 = vector.broadcast %57 : vector<1x32xf32> to vector<16x32xf32>
    %75 = arith.mulf %10, %74 : vector<16x32xf32>
    %cst_22 = arith.constant dense<0.000000e+00> : vector<16x32xf32>
    %76 = tpu.matmul %73, %75, %cst_22 {dimension_numbers = #tpu.dot_dimension_numbers<[1], [0], [0], [1], [0, 0, 1, 1], [], []>} : vector<16x16xf32>, vector<16x32xf32>, vector<16x32xf32> -> vector<16x32xf32>
    %77 = arith.addf %50, %76 : vector<16x32xf32>
    %c16_i32_23 = arith.constant 16 : i32
    %78 = vector.broadcast %c16_i32_23 : i32 to vector<1x32xi32>
    %79 = arith.cmpi sge, %22, %78 : vector<1x32xi32>
    %c24_i32 = arith.constant 24 : i32
    %80 = vector.broadcast %c24_i32 : i32 to vector<1x32xi32>
    %81 = arith.cmpi slt, %22, %80 : vector<1x32xi32>
    %82 = arith.andi %79, %81 : vector<1x32xi1>
    %83 = arith.extui %82 : vector<1x32xi1> to vector<1x32xi32>
    %84 = arith.sitofp %83 : vector<1x32xi32> to vector<1x32xf32>
    %cst_24 = arith.constant 0.353553385 : f32
    %85 = vector.broadcast %cst_24 : f32 to vector<1x32xf32>
    %86 = arith.mulf %85, %84 : vector<1x32xf32>
    %87 = vector.broadcast %86 : vector<1x32xf32> to vector<16x32xf32>
    %88 = arith.mulf %8, %87 : vector<16x32xf32>
    %cst_25 = arith.constant dense<0.000000e+00> : vector<16x16xf32>
    %89 = tpu.matmul %88, %9, %cst_25 {dimension_numbers = #tpu.dot_dimension_numbers<[1], [1], [0], [0], [0, 0, 1, 0], [], []>} : vector<16x32xf32>, vector<16x32xf32>, vector<16x16xf32> -> vector<16x16xf32>
    %90 = arith.addf %89, %21 : vector<16x16xf32>
    %cst_26 = arith.constant dense<0xFF800000> : vector<16xf32>
    %91 = vector.multi_reduction <maximumf>, %90, %cst_26 [1] : vector<16x16xf32> to vector<16xf32>
    %92 = vector.shape_cast %91 : vector<16xf32> to vector<16x1xf32>
    %93 = vector.broadcast %92 : vector<16x1xf32> to vector<16x16xf32>
    %94 = arith.subf %90, %93 : vector<16x16xf32>
    %95 = math.exp %94 : vector<16x16xf32>
    %cst_27 = arith.constant dense<0.000000e+00> : vector<16xf32>
    %96 = vector.multi_reduction <add>, %95, %cst_27 [1] : vector<16x16xf32> to vector<16xf32>
    %97 = vector.shape_cast %96 : vector<16xf32> to vector<16x1xf32>
    %98 = tpu.reciprocal %97 {approx = true} : vector<16x1xf32> -> vector<16x1xf32>
    %99 = vector.broadcast %98 : vector<16x1xf32> to vector<16x16xf32>
    %100 = arith.mulf %95, %99 : vector<16x16xf32>
    %101 = vector.broadcast %84 : vector<1x32xf32> to vector<16x32xf32>
    %102 = arith.mulf %10, %101 : vector<16x32xf32>
    %cst_28 = arith.constant dense<0.000000e+00> : vector<16x32xf32>
    %103 = tpu.matmul %100, %102, %cst_28 {dimension_numbers = #tpu.dot_dimension_numbers<[1], [0], [0], [1], [0, 0, 1, 1], [], []>} : vector<16x16xf32>, vector<16x32xf32>, vector<16x32xf32> -> vector<16x32xf32>
    %104 = arith.addf %77, %103 : vector<16x32xf32>
    %c24_i32_29 = arith.constant 24 : i32
    %105 = vector.broadcast %c24_i32_29 : i32 to vector<1x32xi32>
    %106 = arith.cmpi sge, %22, %105 : vector<1x32xi32>
    %c32_i32 = arith.constant 32 : i32
    %107 = vector.broadcast %c32_i32 : i32 to vector<1x32xi32>
    %108 = arith.cmpi slt, %22, %107 : vector<1x32xi32>
    %109 = arith.andi %106, %108 : vector<1x32xi1>
    %110 = arith.extui %109 : vector<1x32xi1> to vector<1x32xi32>
    %111 = arith.sitofp %110 : vector<1x32xi32> to vector<1x32xf32>
    %cst_30 = arith.constant 0.353553385 : f32
    %112 = vector.broadcast %cst_30 : f32 to vector<1x32xf32>
    %113 = arith.mulf %112, %111 : vector<1x32xf32>
    %114 = vector.broadcast %113 : vector<1x32xf32> to vector<16x32xf32>
    %115 = arith.mulf %8, %114 : vector<16x32xf32>
    %cst_31 = arith.constant dense<0.000000e+00> : vector<16x16xf32>
    %116 = tpu.matmul %115, %9, %cst_31 {dimension_numbers = #tpu.dot_dimension_numbers<[1], [1], [0], [0], [0, 0, 1, 0], [], []>} : vector<16x32xf32>, vector<16x32xf32>, vector<16x16xf32> -> vector<16x16xf32>
    %117 = arith.addf %116, %21 : vector<16x16xf32>
    %cst_32 = arith.constant dense<0xFF800000> : vector<16xf32>
    %118 = vector.multi_reduction <maximumf>, %117, %cst_32 [1] : vector<16x16xf32> to vector<16xf32>
    %119 = vector.shape_cast %118 : vector<16xf32> to vector<16x1xf32>
    %120 = vector.broadcast %119 : vector<16x1xf32> to vector<16x16xf32>
    %121 = arith.subf %117, %120 : vector<16x16xf32>
    %122 = math.exp %121 : vector<16x16xf32>
    %cst_33 = arith.constant dense<0.000000e+00> : vector<16xf32>
    %123 = vector.multi_reduction <add>, %122, %cst_33 [1] : vector<16x16xf32> to vector<16xf32>
    %124 = vector.shape_cast %123 : vector<16xf32> to vector<16x1xf32>
    %125 = tpu.reciprocal %124 {approx = true} : vector<16x1xf32> -> vector<16x1xf32>
    %126 = vector.broadcast %125 : vector<16x1xf32> to vector<16x16xf32>
    %127 = arith.mulf %122, %126 : vector<16x16xf32>
    %128 = vector.broadcast %111 : vector<1x32xf32> to vector<16x32xf32>
    %129 = arith.mulf %10, %128 : vector<16x32xf32>
    %cst_34 = arith.constant dense<0.000000e+00> : vector<16x32xf32>
    %130 = tpu.matmul %127, %129, %cst_34 {dimension_numbers = #tpu.dot_dimension_numbers<[1], [0], [0], [1], [0, 0, 1, 1], [], []>} : vector<16x16xf32>, vector<16x32xf32>, vector<16x32xf32> -> vector<16x32xf32>
    %131 = arith.addf %104, %130 : vector<16x32xf32>
    %c32 = arith.constant 32 : index
    %c0_35 = arith.constant 0 : index
    %132 = vector.load %arg2[%c32, %c0_35] : memref<184x128xf32, #tpu.memory_space<vmem>>, vector<32x32xf32>
    %c177 = arith.constant 177 : index
    %c0_36 = arith.constant 0 : index
    %133 = vector.load %arg2[%c177, %c0_36] : memref<184x128xf32, #tpu.memory_space<vmem>>, vector<1x32xf32>
    %cst_37 = arith.constant dense<0.000000e+00> : vector<16x32xf32>
    %134 = tpu.matmul %131, %132, %cst_37 {dimension_numbers = #tpu.dot_dimension_numbers<[1], [0], [0], [1], [0, 0, 1, 1], [], []>} : vector<16x32xf32>, vector<32x32xf32>, vector<16x32xf32> -> vector<16x32xf32>
    %135 = vector.broadcast %133 : vector<1x32xf32> to vector<16x32xf32>
    %136 = arith.addf %134, %135 : vector<16x32xf32>
    %137 = vector.extract_strided_slice %136 {offsets = [0, 0], sizes = [8, 32], strides = [1, 1]} : vector<16x32xf32> to vector<8x32xf32>
    %138 = vector.extract_strided_slice %136 {offsets = [8, 0], sizes = [8, 32], strides = [1, 1]} : vector<16x32xf32> to vector<8x32xf32>
    %c64 = arith.constant 64 : index
    %c0_38 = arith.constant 0 : index
    %139 = vector.load %arg2[%c64, %c0_38] : memref<184x128xf32, #tpu.memory_space<vmem>>, vector<32x32xf32>
    %c96 = arith.constant 96 : index
    %c0_39 = arith.constant 0 : index
    %140 = vector.load %arg2[%c96, %c0_39] : memref<184x128xf32, #tpu.memory_space<vmem>>, vector<32x32xf32>
    %c178 = arith.constant 178 : index
    %c0_40 = arith.constant 0 : index
    %141 = vector.load %arg2[%c178, %c0_40] : memref<184x128xf32, #tpu.memory_space<vmem>>, vector<1x32xf32>
    %cst_41 = arith.constant dense<0.000000e+00> : vector<8x32xf32>
    %142 = tpu.matmul %137, %139, %cst_41 {dimension_numbers = #tpu.dot_dimension_numbers<[1], [0], [0], [1], [0, 0, 1, 1], [], []>} : vector<8x32xf32>, vector<32x32xf32>, vector<8x32xf32> -> vector<8x32xf32>
    %cst_42 = arith.constant dense<0.000000e+00> : vector<8x32xf32>
    %143 = tpu.matmul %138, %140, %cst_42 {dimension_numbers = #tpu.dot_dimension_numbers<[1], [0], [0], [1], [0, 0, 1, 1], [], []>} : vector<8x32xf32>, vector<32x32xf32>, vector<8x32xf32> -> vector<8x32xf32>
    %144 = arith.addf %142, %143 : vector<8x32xf32>
    %145 = vector.broadcast %141 : vector<1x32xf32> to vector<8x32xf32>
    %146 = arith.addf %144, %145 : vector<8x32xf32>
    %cst_43 = arith.constant 0.000000e+00 : f32
    %147 = vector.broadcast %cst_43 : f32 to vector<8x32xf32>
    %148 = arith.maximumf %146, %147 : vector<8x32xf32>
    %c128 = arith.constant 128 : index
    %c0_44 = arith.constant 0 : index
    %149 = vector.load %arg2[%c128, %c0_44] : memref<184x128xf32, #tpu.memory_space<vmem>>, vector<32x16xf32>
    %c179 = arith.constant 179 : index
    %c0_45 = arith.constant 0 : index
    %150 = vector.load %arg2[%c179, %c0_45] : memref<184x128xf32, #tpu.memory_space<vmem>>, vector<1x16xf32>
    %cst_46 = arith.constant dense<0.000000e+00> : vector<8x16xf32>
    %151 = tpu.matmul %148, %149, %cst_46 {dimension_numbers = #tpu.dot_dimension_numbers<[1], [0], [0], [1], [0, 0, 1, 1], [], []>} : vector<8x32xf32>, vector<32x16xf32>, vector<8x16xf32> -> vector<8x16xf32>
    %152 = vector.broadcast %150 : vector<1x16xf32> to vector<8x16xf32>
    %153 = arith.addf %151, %152 : vector<8x16xf32>
    %cst_47 = arith.constant 0.000000e+00 : f32
    %154 = vector.broadcast %cst_47 : f32 to vector<8x16xf32>
    %155 = arith.maximumf %153, %154 : vector<8x16xf32>
    %c160 = arith.constant 160 : index
    %c0_48 = arith.constant 0 : index
    %156 = vector.load %arg2[%c160, %c0_48] : memref<184x128xf32, #tpu.memory_space<vmem>>, vector<16x3xf32>
    %c180 = arith.constant 180 : index
    %c0_49 = arith.constant 0 : index
    %157 = vector.load %arg2[%c180, %c0_49] : memref<184x128xf32, #tpu.memory_space<vmem>>, vector<1x3xf32>
    %cst_50 = arith.constant dense<0.000000e+00> : vector<8x3xf32>
    %158 = tpu.matmul %155, %156, %cst_50 {dimension_numbers = #tpu.dot_dimension_numbers<[1], [0], [0], [1], [0, 0, 1, 1], [], []>} : vector<8x16xf32>, vector<16x3xf32>, vector<8x3xf32> -> vector<8x3xf32>
    %159 = vector.broadcast %157 : vector<1x3xf32> to vector<8x3xf32>
    %160 = arith.addf %158, %159 : vector<8x3xf32>
    %c0_51 = arith.constant 0 : index
    %c0_52 = arith.constant 0 : index
    %161 = vector.load %arg3[%c0_51, %c0_52] : memref<8x3xf32, #tpu.memory_space<vmem>>, vector<8x3xf32>
    tpu.vector_store %arg3[%c0_51, %c0_52], %160 {strides = array<i32>} : memref<8x3xf32, #tpu.memory_space<vmem>>, vector<8x3xf32>,
    return
  }
}

</mosaic_0001>

<bundles_post_ra>
// kernel: tpu_custom_call.1
= control target key start
LH: loop header
LB: loop body
LE: loop exit
PB: predicated region body
PF: predicated region fallthrough
CT: control target
= control target key end

     0   :  { %8 = vsyncpa [#allocation3], 0  ;;  %s1970_s0 = inlined_call_operand.hbm [shape: f32[8,32], index: 0, kind: input, shape index: {}]   ;;  %s1971_s1 = inlined_call_operand.hbm [shape: f32[8,32], index: 1, kind: input, shape index: {}]   ;;  %s1972_s2 = inlined_call_operand.hbm [shape: f32[184,128], index: 2, kind: input, shape index: {}]   ;;  %s1973_s3 = inlined_call_operand.vmem [shape: f32[8,3], index: 3, kind: output, shape index: {}]  }
   0x1   :  { %9 = vsyncpa [#allocation5], 0  ;;  %s1746_s12 = smov [#allocation4]   ;;  %s1747_s14 = smov [#allocation2]  }
   0x2   :  { %s26_s13 = sshll.u32 %s1746_s12, 4  ;;  %s16_s15 = sshll.u32 %s1747_s14, 4  ;;  %s27_s13 = int_to_ptr.vmem [resolvable:$true] %s26_s13  ;;  %s17_s15 = int_to_ptr.vmem [resolvable:$true] %s16_s15 }
   0x3   :  { %s1690_s16 = scalar_lea.vmem %s27_s13, 128  ;;  %p1695_p1 = scmp.lt.s32.totalorder %s27_s13, %s27_s13 }
   0x4   :  { %p1691_p0 = scmp.ne.s32.totalorder %s27_s13, %s1690_s16  ;;  %p1696_p2 = scmp.lt.s32.totalorder %s1690_s16, %s1690_s16 }
   0x6   :  { %p1697_p3 = por %p1696_p2, %p1695_p1 }
   0x8   :  { %p1698_p4 = pnand %p1697_p3, %p1691_p0 }
   0xa   :  { %1701 = shalt.err (!%p1698_p4)
}
   0xb   :  { %29 = dma.hbm_to_vmem [thread:$0]  %s1971_s1, 128, %s27_s13, [#allocation5]  }
   0xc   :  { %s1710_s19 = scalar_lea.vmem %s17_s15, 128  ;;  %p1715_p6 = scmp.lt.s32.totalorder %s17_s15, %s17_s15 }
   0xd   :  { %p1711_p5 = scmp.ne.s32.totalorder %s17_s15, %s1710_s19  ;;  %p1716_p7 = scmp.lt.s32.totalorder %s1710_s19, %s1710_s19 }
   0xf   :  { %p1717_p8 = por %p1716_p7, %p1715_p6 }
  0x11   :  { %p1718_p9 = pnand %p1717_p8, %p1711_p5 }
  0x13   :  { %1721 = shalt.err (!%p1718_p9)
}
  0x14   :  { %19 = dma.hbm_to_vmem [thread:$0]  %s1970_s0, 128, %s17_s15, [#allocation3]  }
  0x15   :  { %s1748_s22 = smov [#allocation6]  }
  0x16   :  { %s35_s23 = sshll.u32 %s1748_s22, 4  ;;  %s36_s23 = int_to_ptr.vmem [resolvable:$true] %s35_s23 }
  0x17   :  { %s1730_s24 = scalar_lea.vmem %s36_s23, 2944  ;;  %p1735_p11 = scmp.lt.s32.totalorder %s36_s23, %s36_s23 }
  0x18   :  { %p1731_p10 = scmp.ne.s32.totalorder %s36_s23, %s1730_s24  ;;  %p1736_p12 = scmp.lt.s32.totalorder %s1730_s24, %s1730_s24 }
  0x1a   :  { %p1737_p13 = por %p1736_p12, %p1735_p11 }
  0x1c   :  { %p1738_p0 = pnand %p1737_p13, %p1731_p10 }
  0x1e   :  { %1741 = shalt.err (!%p1738_p0)
}
  0x1f   :  { %s1749_s1 = smov 128   ;;  %s1750_s25 = smov 8  }
  0x20   :  { %41 = dma.hbm_to_vmem [thread:$0]  %s1972_s2, 2944, %s36_s23, [#allocation5], %s1749_s1, %s1749_s1, %s1750_s25  }
  0x21   :  { %1742 = dma.done.wait [#allocation3], 128  }
  0x22   :  { %1743 = vsyncadd [#allocation3], 4294967168 }
  0x23   :  { %1744 = dma.done.wait [#allocation5], 3072  }
  0x24   :  { %1745 = vsyncadd [#allocation5], 4294964224  ;;  %vm62_vm0 = vcmask 261120   ;;  %v56_v0 = vld [vmem:[#allocation6 + $0x18] sm:$0xff]  ;;  %v55_v1 = vld [vmem:[#allocation6 + $0x10] sm:$0xff]  ;;  %v147_v6 = vlaneseq  ;;  %v1751_v10 = vmov 0.0  }
  0x25   :  { %1521 = vmatprep.subr.mxu0 %v56_v0  ;;  %v51_v2 = vld [vmem:[#allocation2] sm:$0xff]  ;;  %v54_v3 = vld [vmem:[#allocation6 + $0x8] sm:$0xff]  ;;  %v53_v4 = vld [vmem:[#allocation6] sm:$0xff]  ;;  %s1752_s0 = smov 96   ;;  %vm1753_vm8 = vmmov 1   ;;  %vm256_vm12 = vcmask 130048  }
  0x26   :  { %1522 = vmatpush3.msra.mxu0 %v56_v0  ;;  %1529 = vmatprep.mubr.msk.f32.mxu0 %vm62_vm0, %v51_v2  ;;  %v52_v5 = vld [vmem:[#allocation4] sm:$0xff]  ;;  %v1788_v7 = vand.u32 127, %v147_v6  ;;  %v1418_v8 = vld [vmem:[#allocation6 + $0xb0] ss:$0 sm:$0xff]  ;;  %v1754_v28 = vmov -1e+30  }
  0x27   :  { %1523 = vmatprep.subr.mxu0 %v55_v1  ;;  %s1755_s2 = smov 64  }
  0x28   :  { %1524 = vmatpush3.msra.mxu0 %v55_v1  ;;  %vm285_vm1 = vcmp.ge.s32.totalorder %v1788_v7, 8  ;;  %vm286_vm2 = vcmp.lt.s32.totalorder %v1788_v7, 16  ;;  %vm151_vm3 = vcmp.lt.s32.totalorder %v1788_v7, 8  ;;  %vm580_vm5 = vcmp.ge.s32.totalorder %v1788_v7, 16 }
  0x29   :  { %1525 = vmatprep.subr.mxu0 %v54_v3  ;;  %vm287_vm4 = vmand %vm285_vm1, %vm286_vm2  ;;  %v1796_v11 = vsel %vm151_vm3, 1.0, %v1751_v10  ;;  %vm581_vm6 = vcmp.lt.s32.totalorder %v1788_v7, 24  ;;  %vm788_vm13 = vcmp.ge.s32.totalorder %v1788_v7, 24  ;;  %vm789_vm14 = vcmp.lt.s32.totalorder %v1788_v7, 32 }
  0x2a   :  { %1526 = vmatpush3.msra.mxu0 %v54_v3  ;;  %v1799_v12 = vsel %vm287_vm4, 1.0, %v1751_v10  ;;  %v162_v16 = vmul.f32 0.35355338, %v1796_v11  ;;  %vm582_vm7 = vmand %vm580_vm5, %vm581_vm6  ;;  %vm1756_vm1 = vmmov 0   ;;  %vm1410_vm2 = vcmask 23552  }
  0x2b   :  { %1527 = vmatprep.subr.mxu0 %v53_v4  ;;  %v290_v17 = vmul.f32 0.35355338, %v1799_v12  ;;  %v1435_v21 = vsel %vm582_vm7, 1.0, %v1751_v10  ;;  %vm152_vm9 = vmxor %vm1753_vm8, %vm151_vm3 }
  0x2c   :  { %1528 = vmatpush3.msra.mxu0 %v53_v4  ;;  %v585_v23 = vmul.f32 0.35355338, %v1435_v21  ;;  %vm155_vm10 = vmxor %vm151_vm3, %vm1753_vm8 }
  0x2d   :  { %1530 = vmatmul.mubr.msk.f32.vlgmr.msra.gmra.mxu0 %vm62_vm0, %v52_v5  ;;  %vm154_vm11 = vmxor %vm152_vm9, %vm1753_vm8  ;;  %v1856_v29 = vsel %vm155_vm10, 0.0, %v1754_v28 }
  0x2e   :  { %v1858_v32 = vsel %vm154_vm11, 0.0, %v1754_v28  ;;  %vm790_vm15 = vmand %vm788_vm13, %vm789_vm14 }
  0xed   :  { %v1531_v9 = vpop.f32.mrf.mxu0 }
  0xee   :  { %v1801_v13 = vadd.f32 %v1531_v9, %v1418_v8 }
  0xef   :  { %v135_v14 = vpop.f32.mrf.mxu0 }
  0xf0   :  { %v1803_v15 = vadd.f32 %v1418_v8, %v135_v14  ;;  %169 = vrot.lane.b32.xlu0 %v1801_v13, %s1752_s0  ;;  %v164_v24 = vmul.f32 %v162_v16, %v1801_v13  ;;  %v292_v25 = vmul.f32 %v290_v17, %v1801_v13  ;;  %v587_v27 = vmul.f32 %v585_v23, %v1801_v13 }
  0xf2   :  { %v163_v18 = vmul.f32 %v162_v16, %v1803_v15  ;;  %v291_v19 = vmul.f32 %v290_v17, %v1803_v15  ;;  %v586_v26 = vmul.f32 %v585_v23, %v1803_v15 }
  0xf4   :  { %167 = vrot.lane.b32.xlu0 %v1803_v15, %s1752_s0  ;;  %1536 = vmatprep.mubr.msk.f32.mxu1 %vm62_vm0, %v163_v18 }
  0xf5   :  { %1543 = vmatprep.mubr.msk.f32.mxu0 %vm62_vm0, %v291_v19 }
 0x162   :  { %v1815_v20 = vpop.permute.xlu0 %169 }
 0x163   :  { %1532 = vmatprep.subr.msk.mxu1 %vm62_vm0, %v1815_v20  ;;  %1539 = vmatprep.subr.msk.mxu0 %vm62_vm0, %v1815_v20 }
 0x164   :  { %1533 = vmatpush3.xpose.msk.msra.mxu1 %vm62_vm0, %v1815_v20  ;;  %1540 = vmatpush3.xpose.msk.msra.mxu0 %vm62_vm0, %v1815_v20 }
 0x166   :  { %v1826_v22 = vpop.permute.xlu0 %167 }
 0x167   :  { %1534 = vmatprep.subr.msk.mxu1 %vm62_vm0, %v1826_v22  ;;  %1541 = vmatprep.subr.msk.mxu0 %vm62_vm0, %v1826_v22 }
 0x168   :  { %1535 = vmatpush3.xpose.msk.msra.mxu1 %vm62_vm0, %v1826_v22  ;;  %1542 = vmatpush3.xpose.msk.msra.mxu0 %vm62_vm0, %v1826_v22 }
 0x169   :  { %1560 = vmatprep.subr.msk.mxu0 %vm62_vm0, %v1815_v20 }
 0x16b   :  { %1537 = vmatmul.mubr.msk.f32.vlgmr.msra.gmra.mxu1 %vm62_vm0, %v164_v24  ;;  %1544 = vmatmul.mubr.msk.f32.vlgmr.msra.gmra.mxu0 %vm62_vm0, %v292_v25 }
 0x16c   :  { %1561 = vmatpush3.xpose.msk.msra.mxu0 %vm62_vm0, %v1815_v20  ;;  %1564 = vmatprep.mubr.msk.f32.mxu0 %vm62_vm0, %v586_v26 }
 0x16d   :  { %1562 = vmatprep.subr.msk.mxu0 %vm62_vm0, %v1826_v22 }
 0x170   :  { %1563 = vmatpush3.xpose.msk.msra.mxu0 %vm62_vm0, %v1826_v22 }
 0x173   :  { %1565 = vmatmul.mubr.msk.f32.vlgmr.msra.gmra.mxu0 %vm62_vm0, %v587_v27 }
 0x22b   :  { %v1538_v30 = vpop.f32.mrf.mxu1  ;;  %v1545_v31 = vpop.f32.mrf.mxu0 }
 0x22c   :  { %v371_v33 = vadd.f32 %v1545_v31, %v1856_v29  ;;  %v253_v40 = vadd.f32 %v1538_v30, %v1856_v29 }
 0x22d   :  { %v247_v34 = vpop.f32.mrf.mxu1  ;;  %v365_v35 = vpop.f32.mrf.mxu0 }
 0x22e   :  { %v248_v36 = vadd.f32 %v247_v34, %v1858_v32  ;;  %v366_v37 = vadd.f32 %v365_v35, %v1858_v32  ;;  %v377_v38 = vsel %vm256_vm12, %v371_v33, -inf  ;;  %v260_v42 = vsel %vm256_vm12, %v253_v40, -inf }
 0x22f   :  { %378 = vmax.xlane.f32.xlu1 %v377_v38 }
 0x230   :  { %v257_v39 = vsel %vm256_vm12, %v248_v36, -inf  ;;  %v374_v41 = vsel %vm256_vm12, %v366_v37, -inf }
 0x231   :  { %258 = vmax.xlane.f32.xlu0 %v257_v39 }
 0x233   :  { %375 = vmax.xlane.f32.xlu1 %v374_v41  ;;  %v1566_v43 = vpop.f32.mrf.mxu0 }
 0x234   :  { %v666_v44 = vadd.f32 %v1566_v43, %v1856_v29 }
 0x235   :  { %v660_v45 = vpop.f32.mrf.mxu0 }
 0x236   :  { %v661_v46 = vadd.f32 %v660_v45, %v1858_v32  ;;  %v672_v47 = vsel %vm256_vm12, %v666_v44, -inf }
 0x237   :  { %261 = vmax.xlane.f32.xlu1 %v260_v42 }
 0x238   :  { %v669_v48 = vsel %vm256_vm12, %v661_v46, -inf }
 0x247   :  { %692 = vrot.lane.b32.xlu0 %v1435_v21, %s1755_s2 }
 0x248   :  { %397 = vrot.lane.b32.xlu1 %v1799_v12, %s1755_s2 }
 0x26c   :  { %673 = vmax.xlane.f32.xlu1 %v672_v47 }
 0x270   :  { %670 = vmax.xlane.f32.xlu1 %v669_v48 }
 0x281   :  { %280 = vrot.lane.b32.xlu1 %v1796_v11, %s1755_s2 }
 0x2b8   :  { %v379_v49 = vpop.xlane.xlu1 %378 }
 0x2b9   :  { %v381_v55 = vsub.f32 %v371_v33, %v379_v49 }
 0x2ba   :  { %v259_v60 = vpop.xlane.xlu0 %258 }
 0x2bb   :  { %v384_v56 = vmul.f32 1.442695, %v381_v55  ;;  %v263_v6 = vsub.f32 %v248_v36, %v259_v60 }
 0x2bc   :  { %v376_v50 = vpop.xlane.xlu1 %375 }
 0x2bd   :  { %1650 = vpow2.f32 %v384_v56  ;;  %v380_v4 = vsub.f32 %v366_v37, %v376_v50  ;;  %v265_v9 = vmul.f32 1.442695, %v263_v6 }
 0x2be   :  { %v693_v1 = vpop.permute.xlu0 %692 }
 0x2bf   :  { %v695_v2 = vmul.f32 %v693_v1, %v1803_v15  ;;  %v382_v8 = vmul.f32 1.442695, %v380_v4  ;;  %v696_v33 = vmul.f32 %v693_v1, %v1801_v13 }
 0x2c0   :  { %v262_v51 = vpop.xlane.xlu1 %261 }
 0x2c1   :  { %v264_v3 = vsub.f32 %v253_v40, %v262_v51 }
 0x2c3   :  { %v267_v5 = vmul.f32 1.442695, %v264_v3 }
 0x2c4   :  { %v398_v52 = vpop.permute.xlu1 %397 }
 0x2c5   :  { %v400_v53 = vmul.f32 %v398_v52, %v1803_v15  ;;  %v401_v54 = vmul.f32 %v398_v52, %v1801_v13  ;;  %1652 = vpow2.f32 %v267_v5  ;;  %v1442_v52 = vsel %vm790_vm15, 1.0, %v1751_v10 }
 0x2c6   :  { %1654 = vpow2.f32 %v382_v8  ;;  %v793_v55 = vmul.f32 0.35355338, %v1442_v52 }
 0x2c7   :  { %404 = vrot.lane.b32.xlu1 %v400_v53, %s1755_s2  ;;  %406 = vrot.lane.b32.xlu0 %v401_v54, %s1755_s2  ;;  %1656 = vpow2.f32 %v265_v9 }
 0x2ca   :  { %v1881_v57 = vpop.eup %1650 }
 0x2cb   :  { %v389_v58 = vsel %vm256_vm12, %v1881_v57, 0.0 }
 0x2d2   :  { %v1653_v17 = vpop.eup %1652 }
 0x2d3   :  { %v272_v18 = vsel %vm256_vm12, %v1653_v17, 0.0  ;;  %v1655_v19 = vpop.eup %1654 }
 0x2d4   :  { %v386_v21 = vsel %vm256_vm12, %v1655_v19, 0.0  ;;  %v1657_v23 = vpop.eup %1656 }
 0x2d5   :  { %v269_v24 = vsel %vm256_vm12, %v1657_v23, 0.0 }
 0x2e6   :  { %390 = vadd.xlane.f32.xlu0 %v389_v58  ;;  %v795_v58 = vmul.f32 %v793_v55, %v1801_v13 }
 0x2f5   :  { %v674_v59 = vpop.xlane.xlu1 %673 }
 0x2f6   :  { %v676_v11 = vsub.f32 %v666_v44, %v674_v59 }
 0x2f8   :  { %v679_v12 = vmul.f32 1.442695, %v676_v11 }
 0x2f9   :  { %v671_v61 = vpop.xlane.xlu1 %670 }
 0x2fa   :  { %v675_v14 = vsub.f32 %v661_v46, %v671_v61  ;;  %1658 = vpow2.f32 %v679_v12 }
 0x2fc   :  { %v677_v16 = vmul.f32 1.442695, %v675_v14 }
 0x2fd   :  { %v281_v62 = vpop.permute.xlu1 %280 }
 0x2fe   :  { %v283_v63 = vmul.f32 %v281_v62, %v1803_v15  ;;  %v284_v0 = vmul.f32 %v281_v62, %v1801_v13  ;;  %1660 = vpow2.f32 %v677_v16 }
 0x300   :  { %495 = vrot.lane.b32.xlu1 %v284_v0, %s1755_s2  ;;  %493 = vrot.lane.b32.xlu0 %v283_v63, %s1755_s2 }
 0x304   :  { %699 = vrot.lane.b32.xlu0 %v695_v2, %s1755_s2 }
 0x307   :  { %v1659_v25 = vpop.eup %1658 }
 0x308   :  { %v684_v26 = vsel %vm256_vm12, %v1659_v25, 0.0 }
 0x30b   :  { %v1661_v27 = vpop.eup %1660 }
 0x30c   :  { %v681_v28 = vsel %vm256_vm12, %v1661_v27, 0.0 }
 0x324   :  { %273 = vadd.xlane.f32.xlu1 %v272_v18 }
 0x328   :  { %387 = vadd.xlane.f32.xlu1 %v386_v21 }
 0x32c   :  { %270 = vadd.xlane.f32.xlu1 %v269_v24 }
 0x330   :  { %685 = vadd.xlane.f32.xlu1 %v684_v26 }
 0x334   :  { %682 = vadd.xlane.f32.xlu1 %v681_v28 }
 0x339   :  { %v407_v30 = vpop.permute.xlu0 %406  ;;  %v405_v31 = vpop.permute.xlu1 %404 }
 0x33a   :  { %1546 = vmatprep.subr.mxu1 %v407_v30 }
 0x33b   :  { %1547 = vmatpush3.msra.mxu1 %v407_v30  ;;  %v999_v30 = vld [vmem:[#allocation6 + $0x38] sm:$0xff] }
 0x33c   :  { %1548 = vmatprep.subr.mxu1 %v405_v31 }
 0x33d   :  { %1549 = vmatpush3.msra.mxu1 %v405_v31 }
 0x345   :  { %701 = vrot.lane.b32.xlu1 %v696_v33, %s1755_s2 }
 0x36f   :  { %v391_v36 = vpop.xlane.xlu0 %390 }
 0x370   :  { %1662 = vrcp.f32 %v391_v36  ;;  %v997_v36 = vld [vmem:[#allocation6 + $0x28] sm:$0xff] }
 0x372   :  { %v496_v34 = vpop.permute.xlu1 %495 }
 0x373   :  { %1553 = vmatprep.subr.mxu1 %v496_v34  ;;  %v494_v46 = vpop.permute.xlu0 %493 }
 0x377   :  { %v700_v51 = vpop.permute.xlu0 %699 }
 0x37d   :  { %v1663_v41 = vpop.eup %1662 }
 0x37e   :  { %v395_v44 = vmul.f32 %v1663_v41, %v1881_v57  ;;  %v794_v57 = vmul.f32 %v793_v55, %v1803_v15  ;;  %v1249_v55 = vld [vmem:[#allocation6 + $0x90] sm:$0xff] }
 0x3ad   :  { %v274_v35 = vpop.xlane.xlu1 %273 }
 0x3b1   :  { %v388_v37 = vpop.xlane.xlu1 %387 }
 0x3b2   :  { %1664 = vrcp.f32 %v388_v37  ;;  %v996_v37 = vld [vmem:[#allocation6 + $0x20] sm:$0xff] }
 0x3b3   :  { %1666 = vrcp.f32 %v274_v35 }
 0x3b5   :  { %v271_v38 = vpop.xlane.xlu1 %270 }
 0x3b6   :  { %1668 = vrcp.f32 %v271_v38  ;;  %v1093_v38 = vld [vmem:[#allocation6 + $0x78] sm:$0xff] }
 0x3b9   :  { %v686_v39 = vpop.xlane.xlu1 %685 }
 0x3ba   :  { %1670 = vrcp.f32 %v686_v39  ;;  %v1092_v39 = vld [vmem:[#allocation6 + $0x70] sm:$0xff] }
 0x3bd   :  { %v683_v40 = vpop.xlane.xlu1 %682 }
 0x3be   :  { %1672 = vrcp.f32 %v683_v40 }
 0x3bf   :  { %v1665_v42 = vpop.eup %1664 }
 0x3c0   :  { %v394_v43 = vmul.f32 %v1665_v42, %v1655_v19  ;;  %v1667_v45 = vpop.eup %1666 }
 0x3c1   :  { %v278_v49 = vmul.f32 %v1667_v45, %v1653_v17  ;;  %v702_v50 = vpop.permute.xlu1 %701  ;;  %v1091_v45 = vld [vmem:[#allocation6 + $0x68] sm:$0xff] }
 0x3c2   :  { %1550 = vmatprep.mubr.msk.f32.mxu1 %vm256_vm12, %v394_v43 }
 0x3c3   :  { %v1669_v47 = vpop.eup %1668  ;;  %1551 = vmatmul.mubr.msk.f32.vlgmr.msra.gmra.mxu1 %vm256_vm12, %v395_v44  ;;  %v1089_v44 = vld [vmem:[#allocation6 + $0x58] sm:$0xff] }
 0x3c4   :  { %1554 = vmatpush3.msra.mxu1 %v496_v34  ;;  %v277_v48 = vmul.f32 %v1669_v47, %v1657_v23  ;;  %v1090_v47 = vld [vmem:[#allocation6 + $0x60] sm:$0xff] }
 0x3c5   :  { %1555 = vmatprep.subr.mxu1 %v494_v46 }
 0x3c6   :  { %1556 = vmatpush3.msra.mxu1 %v494_v46  ;;  %1557 = vmatprep.mubr.msk.f32.mxu1 %vm256_vm12, %v277_v48  ;;  %v1088_v46 = vld [vmem:[#allocation6 + $0x50] sm:$0xff]  ;;  %v1087_v48 = vld [vmem:[#allocation6 + $0x48] sm:$0xff] }
 0x3c7   :  { %1567 = vmatprep.subr.mxu1 %v702_v50  ;;  %1558 = vmatmul.mubr.msk.f32.vlgmr.msra.gmra.mxu1 %vm256_vm12, %v278_v49  ;;  %v1671_v53 = vpop.eup %1670  ;;  %v1086_v49 = vld [vmem:[#allocation6 + $0x40] sm:$0xff] }
 0x3c8   :  { %1568 = vmatpush3.msra.mxu1 %v702_v50  ;;  %v690_v56 = vmul.f32 %v1671_v53, %v1659_v25  ;;  %v1449_v50 = vld [vmem:[#allocation6 + $0xb1] ss:$0 sm:$0xff] }
 0x3c9   :  { %1569 = vmatprep.subr.mxu1 %v700_v51 }
 0x3ca   :  { %1570 = vmatpush3.msra.mxu1 %v700_v51 }
 0x3cb   :  { %v1673_v7 = vpop.eup %1672  ;;  %1574 = vmatprep.subr.msk.mxu1 %vm62_vm0, %v1815_v20 }
 0x3cc   :  { %v689_v54 = vmul.f32 %v1673_v7, %v1661_v27 }
 0x3ce   :  { %1571 = vmatprep.mubr.msk.f32.mxu1 %vm256_vm12, %v689_v54  ;;  %v1250_v54 = vld [vmem:[#allocation6 + $0x98] sm:$0xff] }
 0x3cf   :  { %1572 = vmatmul.mubr.msk.f32.vlgmr.msra.gmra.mxu1 %vm256_vm12, %v690_v56  ;;  %v1248_v56 = vld [vmem:[#allocation6 + $0x88] sm:$0xff] }
 0x3d0   :  { %1575 = vmatpush3.xpose.msk.msra.mxu1 %vm62_vm0, %v1815_v20  ;;  %1578 = vmatprep.mubr.msk.f32.mxu1 %vm62_vm0, %v794_v57  ;;  %v1247_v57 = vld [vmem:[#allocation6 + $0x80] sm:$0xff] }
 0x3d1   :  { %1576 = vmatprep.subr.msk.mxu1 %vm62_vm0, %v1826_v22 }
 0x3d4   :  { %1577 = vmatpush3.xpose.msk.msra.mxu1 %vm62_vm0, %v1826_v22 }
 0x3d5   :  { %1599 = vmatprep.subr.mxu1 %v1751_v10 }
 0x3d7   :  { %1579 = vmatmul.mubr.msk.f32.vlgmr.msra.gmra.mxu1 %vm62_vm0, %v795_v58 }
 0x3d8   :  { %1600 = vmatpush3.msra.mxu1 %v1093_v38  ;;  %1607 = vmatprep.mubr.msk.f32.mxu1 %vm1756_vm1, %v1751_v10 }
 0x3d9   :  { %1601 = vmatprep.subr.mxu1 %v1751_v10 }
 0x3da   :  { %1602 = vmatpush3.msra.mxu1 %v1092_v39 }
 0x3db   :  { %1603 = vmatprep.subr.mxu1 %v1751_v10 }
 0x3dc   :  { %1604 = vmatpush3.msra.mxu1 %v1091_v45 }
 0x3dd   :  { %1605 = vmatprep.subr.mxu1 %v1751_v10 }
 0x3de   :  { %1606 = vmatpush3.msra.mxu1 %v1090_v47 }
 0x3df   :  { %1621 = vmatprep.subr.mxu1 %v1751_v10 }
 0x483   :  { %v1552_v59 = vpop.f32.mrf.mxu1 }
 0x485   :  { %v482_v60 = vpop.f32.mrf.mxu1 }
 0x487   :  { %v1559_v61 = vpop.f32.mrf.mxu1 }
 0x488   :  { %v577_v62 = vadd.f32 %v1559_v61, %v1552_v59 }
 0x489   :  { %v571_v63 = vpop.f32.mrf.mxu1 }
 0x48a   :  { %v572_v20 = vadd.f32 %v571_v63, %v482_v60  ;;  %v1454_v60 = vld [vmem:[#allocation6 + $0xb2] ss:$0 sm:$0xff] }
 0x48f   :  { %v1573_v0 = vpop.f32.mrf.mxu1 }
 0x490   :  { %v1921_v1 = vadd.f32 %v1573_v0, %v577_v62 }
 0x491   :  { %v777_v2 = vpop.f32.mrf.mxu1 }
 0x492   :  { %v1923_v3 = vadd.f32 %v777_v2, %v572_v20  ;;  %v1330_v2 = vld [vmem:[#allocation6 + $0xa0] sm:$0xff] }
 0x497   :  { %v1580_v4 = vpop.f32.mrf.mxu1 }
 0x498   :  { %v874_v22 = vadd.f32 %v1580_v4, %v1856_v29 }
 0x499   :  { %v868_v5 = vpop.f32.mrf.mxu1 }
 0x49a   :  { %v869_v6 = vadd.f32 %v868_v5, %v1858_v32  ;;  %v880_v8 = vsel %vm256_vm12, %v874_v22, -inf }
 0x49b   :  { %881 = vmax.xlane.f32.xlu0 %v880_v8  ;;  %v1457_v8 = vld [vmem:[#allocation6 + $0xb4] ss:$0 sm:$0xff] }
 0x49c   :  { %v877_v9 = vsel %vm256_vm12, %v869_v6, -inf }
 0x49d   :  { %878 = vmax.xlane.f32.xlu1 %v877_v9 }
 0x4b1   :  { %900 = vrot.lane.b32.xlu0 %v1442_v52, %s1755_s2 }
 0x524   :  { %v882_v11 = vpop.xlane.xlu0 %881 }
 0x525   :  { %v884_v12 = vsub.f32 %v874_v22, %v882_v11 }
 0x526   :  { %v879_v14 = vpop.xlane.xlu1 %878 }
 0x527   :  { %v887_v16 = vmul.f32 1.442695, %v884_v12  ;;  %v883_v17 = vsub.f32 %v869_v6, %v879_v14 }
 0x528   :  { %v901_v18 = vpop.permute.xlu0 %900 }
 0x529   :  { %1674 = vpow2.f32 %v887_v16  ;;  %v885_v19 = vmul.f32 1.442695, %v883_v17  ;;  %v903_v29 = vmul.f32 %v901_v18, %v1803_v15  ;;  %v904_v25 = vmul.f32 %v901_v18, %v1801_v13  ;;  %v998_v13 = vld [vmem:[#allocation6 + $0x30] sm:$0xff] }
 0x52b   :  { %1676 = vpow2.f32 %v885_v19  ;;  %907 = vrot.lane.b32.xlu0 %v903_v29, %s1755_s2 }
 0x536   :  { %v1675_v32 = vpop.eup %1674 }
 0x537   :  { %v892_v21 = vsel %vm256_vm12, %v1675_v32, 0.0 }
 0x538   :  { %v1677_v23 = vpop.eup %1676  ;;  %893 = vadd.xlane.f32.xlu1 %v892_v21 }
 0x539   :  { %v889_v24 = vsel %vm256_vm12, %v1677_v23, 0.0 }
 0x53c   :  { %890 = vadd.xlane.f32.xlu1 %v889_v24 }
 0x54d   :  { %909 = vrot.lane.b32.xlu1 %v904_v25, %s1755_s2 }
 0x59d   :  { %v908_v28 = vpop.permute.xlu0 %907 }
 0x5c1   :  { %v894_v26 = vpop.xlane.xlu1 %893 }
 0x5c2   :  { %1678 = vrcp.f32 %v894_v26 }
 0x5c5   :  { %v891_v27 = vpop.xlane.xlu1 %890 }
 0x5c6   :  { %1680 = vrcp.f32 %v891_v27 }
 0x5c9   :  { %v910_v15 = vpop.permute.xlu1 %909 }
 0x5ca   :  { %1581 = vmatprep.subr.mxu0 %v910_v15 }
 0x5cb   :  { %1582 = vmatpush3.msra.mxu0 %v910_v15 }
 0x5cc   :  { %1583 = vmatprep.subr.mxu0 %v908_v28 }
 0x5cd   :  { %1584 = vmatpush3.msra.mxu0 %v908_v28 }
 0x5ce   :  { %1588 = vmatprep.subr.mxu0 %v999_v30 }
 0x5cf   :  { %v1679_v31 = vpop.eup %1678 }
 0x5d0   :  { %v898_v35 = vmul.f32 %v1679_v31, %v1675_v32 }
 0x5d3   :  { %v1681_v33 = vpop.eup %1680 }
 0x5d4   :  { %v897_v34 = vmul.f32 %v1681_v33, %v1677_v23 }
 0x5d6   :  { %1585 = vmatprep.mubr.msk.f32.mxu0 %vm256_vm12, %v897_v34 }
 0x5d7   :  { %1586 = vmatmul.mubr.msk.f32.vlgmr.msra.gmra.mxu0 %vm256_vm12, %v898_v35 }
 0x5d8   :  { %1589 = vmatpush3.msra.mxu0 %v999_v30 }
 0x5d9   :  { %1590 = vmatprep.subr.mxu0 %v998_v13 }
 0x5da   :  { %1591 = vmatpush3.msra.mxu0 %v998_v13 }
 0x5db   :  { %1592 = vmatprep.subr.mxu0 %v997_v36 }
 0x5dc   :  { %1593 = vmatpush3.msra.mxu0 %v997_v36 }
 0x5dd   :  { %1594 = vmatprep.subr.mxu0 %v996_v37 }
 0x5de   :  { %1595 = vmatpush3.msra.mxu0 %v996_v37 }
 0x5df   :  { %1610 = vmatprep.subr.mxu0 %v1751_v10 }
 0x697   :  { %v1587_v40 = vpop.f32.mrf.mxu0 }
 0x698   :  { %v995_v43 = vadd.f32 %v1587_v40, %v1921_v1  ;;  %v1331_v1 = vld [vmem:[#allocation6 + $0xa8] sm:$0xff] }
 0x699   :  { %v985_v41 = vpop.f32.mrf.mxu0 }
 0x69a   :  { %v994_v42 = vadd.f32 %v985_v41, %v1923_v3  ;;  %v1455_v3 = vld [vmem:[#allocation6 + $0xb3] ss:$0 sm:$0xff] }
 0x69c   :  { %1596 = vmatprep.mubr.msk.f32.mxu0 %vm62_vm0, %v994_v42 }
 0x69d   :  { %1597 = vmatmul.mubr.msk.f32.vlgmr.msra.gmra.mxu0 %vm62_vm0, %v995_v43 }
 0x69e   :  { %1611 = vmatpush3.msra.mxu0 %v1089_v44  ;;  %1618 = vmatprep.mubr.msk.f32.mxu0 %vm1756_vm1, %v1751_v10 }
 0x69f   :  { %1612 = vmatprep.subr.mxu0 %v1751_v10 }
 0x6a0   :  { %1613 = vmatpush3.msra.mxu0 %v1088_v46 }
 0x6a1   :  { %1614 = vmatprep.subr.mxu0 %v1751_v10 }
 0x6a2   :  { %1615 = vmatpush3.msra.mxu0 %v1087_v48 }
 0x6a3   :  { %1616 = vmatprep.subr.mxu0 %v1751_v10 }
 0x6a4   :  { %1617 = vmatpush3.msra.mxu0 %v1086_v49 }
 0x6a5   :  { %1632 = vmatprep.subr.mxu0 %v1751_v10 }
 0x75d   :  { %v1598_v51 = vpop.f32.mrf.mxu0 }
 0x75e   :  { %v1083_v52 = vadd.f32 %v1598_v51, %v1449_v50 }
 0x75f   :  { %v1077_v53 = vpop.f32.mrf.mxu0 }
 0x760   :  { %v1078_v7 = vadd.f32 %v1449_v50, %v1077_v53  ;;  %1608 = vmatmul.mubr.msk.f32.vlgmr.msra.gmra.mxu1 %vm62_vm0, %v1083_v52 }
 0x761   :  { %1629 = vmatprep.mubr.msk.f32.mxu1 %vm1756_vm1, %v1751_v10  ;;  %1622 = vmatpush3.msra.mxu1 %v1250_v54 }
 0x762   :  { %1619 = vmatmul.mubr.msk.f32.vlgmr.msra.gmra.mxu0 %vm62_vm0, %v1078_v7  ;;  %1623 = vmatprep.subr.mxu1 %v1751_v10 }
 0x763   :  { %1636 = vmatprep.mubr.msk.f32.mxu0 %vm1756_vm1, %v1751_v10  ;;  %1624 = vmatpush3.msra.mxu1 %v1249_v55 }
 0x764   :  { %1625 = vmatprep.subr.mxu1 %v1751_v10  ;;  %1633 = vmatpush3.msra.mxu0 %v1331_v1 }
 0x765   :  { %1626 = vmatpush3.msra.mxu1 %v1248_v56  ;;  %1634 = vmatprep.subr.mxu0 %v1751_v10 }
 0x766   :  { %1627 = vmatprep.subr.mxu1 %v1751_v10  ;;  %1635 = vmatpush3.msra.mxu0 %v1330_v2 }
 0x767   :  { %1628 = vmatpush3.msra.mxu1 %v1247_v57 }
 0x820   :  { %v1164_v58 = vpop.f32.mrf.mxu1 }
 0x822   :  { %v1609_v59 = vpop.f32.mrf.mxu1  ;;  %v1237_v61 = vpop.f32.mrf.mxu0 }
 0x823   :  { %v1238_v62 = vadd.f32 %v1237_v61, %v1164_v58 }
 0x824   :  { %v1620_v63 = vpop.f32.mrf.mxu0 }
 0x825   :  { %v1245_v20 = vadd.f32 %v1454_v60, %v1238_v62 }
 0x827   :  { %v1246_v0 = vmax.f32 %v1245_v20, 0.0 }
 0x829   :  { %1630 = vmatmul.mubr.msk.f32.vlgmr.msra.gmra.mxu1 %vm62_vm0, %v1246_v0 }
 0x8e9   :  { %v1325_v4 = vpop.f32.mrf.mxu1 }
 0x8ea   :  { %v1326_v22 = vadd.f32 %v1455_v3, %v1325_v4 }
 0x8eb   :  { %v1631_v5 = vpop.f32.mrf.mxu1 }
 0x8ec   :  { %v1329_v6 = vmax.f32 %v1326_v22, 0.0 }
 0x8ee   :  { %1637 = vmatmul.mubr.msk.f32.vlgmr.msra.gmra.mxu0 %vm256_vm12, %v1329_v6 }
 0x9ae   :  { %v1406_v9 = vpop.f32.mrf.mxu0 }
 0x9af   :  { %v1407_v11 = vadd.f32 %v1457_v8, %v1406_v9 }
 0x9b0   :  { %v1638_v12 = vpop.f32.mrf.mxu0 }
 0x9b1   :  { %1411 = vst.msk [vmem:[%s1973_s3] sm:$0xff] %vm1410_vm2, %v1407_v11 }
 0x9b2   :  { %1416 = vsyncpa [#allocation3], 1 }
 0x9b3   :  { %1417 = vsyncpa [#allocation5], 1 }

</bundles_post_ra>
